<compile_context>
chip_gen: v6e
topology: v6e:2x2x1
jax: 0.10.0
libtpu: 0.0.40
codegen_flags: <defaults>
</compile_context>

<pallas_src>
import functools

import jax
import jax.numpy as jnp
from jax.experimental import pallas as pl
from jax.experimental.pallas import tpu as pltpu

D_MODEL = 32
N_HEADS = 4
HEAD_DIM = D_MODEL // N_HEADS
D_FF = 4 * D_MODEL
EPS = 1e-5


def _layernorm_rows(h, gamma, beta):
    # h: (rows, D) f32; gamma/beta: (1, D)
    mu = jnp.mean(h, axis=-1, keepdims=True)
    var = jnp.mean(jnp.square(h - mu), axis=-1, keepdims=True)
    return (h - mu) * jax.lax.rsqrt(var + EPS) * gamma + beta


def transformer_block_kernel(
    x_ref,
    ln1_g_ref, ln1_b_ref,
    wq_ref, bq_ref, wk_ref, bk_ref, wv_ref, bv_ref, wo_ref, bo_ref,
    ln2_g_ref, ln2_b_ref,
    w1_ref, b1_ref, w2_ref, b2_ref,
    o_ref,
    *, seq, n_heads, head_dim, matmul_dtype,
):
    rows, d = x_ref.shape            # (TB*S, D) flat row slab
    tb = rows // seq

    def mm(a, w):
        # MXU matmul; f32 accumulation regardless of operand dtype.
        return jnp.dot(a.astype(matmul_dtype), w.astype(matmul_dtype),
                       preferred_element_type=jnp.float32)

    x = x_ref[...].astype(jnp.float32)                       # (R, D)

    # ---- LayerNorm 1 (f32 VPU math) ----
    h = _layernorm_rows(x, ln1_g_ref[...], ln1_b_ref[...])

    # ---- QKV projections (one big matmul each over all TB*S rows).
    #      1/sqrt(head_dim) was folded into Wq/bq host-side (prepare_params). ----
    q = mm(h, wq_ref[...]) + bq_ref[...]
    k = mm(h, wk_ref[...]) + bk_ref[...]
    v = mm(h, wv_ref[...]) + bv_ref[...]

    # Per-example structure (leading-dim split only; layout-preserving for S % 8 == 0).
    q3 = q.reshape(tb, seq, d)
    k3 = k.reshape(tb, seq, d)
    v3 = v.reshape(tb, seq, d)

    def stack_heads(t3):
        # (TB, S, D) -> (H*TB, S, hd): heads stacked on the leading/batch axis so the
        # score & PV matmuls stay in the single-batch-dim einsum form and the softmax
        # runs once over every head.
        return jnp.concatenate(
            [t3[:, :, hh * head_dim:(hh + 1) * head_dim] for hh in range(n_heads)],
            axis=0)

    qh = stack_heads(q3)                                      # (H*TB, S, hd)
    kh = stack_heads(k3)
    vh = stack_heads(v3)

    # ---- causal mask, built once per grid step, broadcast over (H*TB) ----
    row_i = jax.lax.broadcasted_iota(jnp.int32, (seq, seq), 0)
    col_i = jax.lax.broadcasted_iota(jnp.int32, (seq, seq), 1)
    causal = (col_i <= row_i)[None, :, :]                     # (1, S, S)

    # ---- causal multi-head attention (all heads in one batched stream) ----
    s = jnp.einsum('bqd,bkd->bqk', qh.astype(matmul_dtype), kh.astype(matmul_dtype),
                   preferred_element_type=jnp.float32)        # (H*TB, S, S)
    s = jnp.where(causal, s, jnp.float32(-1e30))
    s = s - jnp.max(s, axis=-1, keepdims=True)
    p = jnp.exp(s)
    denom = jnp.sum(p, axis=-1, keepdims=True)                # (H*TB, S, 1)
    ctx = jnp.einsum('bqk,bkd->bqd', p.astype(matmul_dtype), vh.astype(matmul_dtype),
                     preferred_element_type=jnp.float32)      # (H*TB, S, hd)
    # Normalize the small (H*TB, S, hd) context, not the (H*TB, S, S) prob tensor.
    ctx = ctx * pl.reciprocal(denom, approx=True)

    # Merge heads back onto the lane axis (head order matches Wo's row blocks) and run
    # the output projection as a single K=D contraction.
    ctx_merged = jnp.concatenate(
        [ctx[hh * tb:(hh + 1) * tb].reshape(rows, head_dim) for hh in range(n_heads)],
        axis=-1)                                              # (R, D)
    attn = mm(ctx_merged, wo_ref[...]) + bo_ref[...]

    # ---- residual 1 ----
    x1 = x + attn

    # ---- LayerNorm 2 ----
    h2 = _layernorm_rows(x1, ln2_g_ref[...], ln2_b_ref[...])

    # ---- FeedForward: Linear -> GELU(tanh) -> Linear ----
    ff = mm(h2, w1_ref[...]) + b1_ref[...]
    ff = jax.nn.gelu(ff, approximate=True)
    ff = mm(ff, w2_ref[...]) + b2_ref[...]

    # ---- residual 2 ----
    o_ref[...] = (x1 + ff).astype(o_ref.dtype)


def _vmem_limit_bytes():
    """Generation-aware VMEM limit: ~3/4 of physical capacity, capped at 100 MiB.
    v5e/v6e (128 MiB) -> ~96 MiB; v7x (64 MiB) -> ~48 MiB."""
    try:
        cap = int(pltpu.get_tpu_info().vmem_capacity_bytes)
    except Exception:
        cap = 64 * 1024 * 1024          # conservative (v7x-sized) fallback
    return min((cap * 3) // 4, 100 * 1024 * 1024)


def _choose_tb(B, S, n_heads, *, vmem_budget_bytes, target_rows=2048):
    """Batch elements per grid step.

    Prefers fat row slabs (~target_rows rows) to amortise the ~0.35us/step overhead,
    capped so the live f32 attention intermediates (scores + probs over all heads) and
    the (rows, D_FF) MLP slabs fit the VMEM budget, and prefers an even number of grid
    steps (v7x dual TensorCore) when that keeps at least half the rows per step.
    """
    divisors = [t for t in range(1, B + 1) if B % t == 0]

    def fits(t):
        rows = t * S
        if rows % 8 != 0 and t != B:          # BlockSpec sublane constraint on row axis
            return False
        score_bytes = 2 * n_heads * t * S * S * 4            # scores + probs (f32)
        slab_bytes = 10 * rows * max(D_MODEL, D_FF) * 4       # q/k/v/h/ff/... headroom
        return score_bytes + slab_bytes <= vmem_budget_bytes

    cands = [t for t in divisors if fits(t)] or [1]
    under = [t for t in cands if t * S <= target_rows]
    tb = max(under) if under else min(cands)

    steps = B // tb
    if steps == 1:
        two = [t for t in cands if B // t == 2 and t * S >= 256]
        if two:
            tb = max(two)
    elif steps % 2 == 1:
        even = [t for t in cands if (B // t) % 2 == 0 and 2 * t * S >= tb * S]
        if even:
            tb = max(even)
    return tb


def prepare_params(params):
    """One-time host-side transform: fold 1/sqrt(head_dim) into Wq / bq."""
    scale = 1.0 / (HEAD_DIM ** 0.5)
    p = dict(params)
    p["wq"] = params["wq"] * scale
    p["bq"] = params["bq"] * scale
    return p


def transformer_block(x, params, *, matmul_dtype=jnp.bfloat16):
    B, S, D = x.shape
    assert D == D_MODEL
    vmem_limit = _vmem_limit_bytes()
    TB = _choose_tb(B, S, N_HEADS, vmem_budget_bytes=vmem_limit // 2)
    grid = (B // TB,)
    R_BLK = TB * S

    # Wrapper-side flatten (pure layout plumbing): kernel sees (TB*S, D) row slabs.
    x2 = x.reshape(B * S, D)

    def const(shape):
        return pl.BlockSpec(shape, lambda b, _s=shape: tuple(0 for _ in _s))

    in_specs = [
        pl.BlockSpec((R_BLK, D), lambda b: (b, 0)),       # x row slab
        const((1, D)), const((1, D)),                     # ln1 gamma/beta
        const((D, D)), const((1, D)),                     # Wq (pre-scaled), bq
        const((D, D)), const((1, D)),                     # Wk, bk
        const((D, D)), const((1, D)),                     # Wv, bv
        const((D, D)), const((1, D)),                     # Wo, bo
        const((1, D)), const((1, D)),                     # ln2 gamma/beta
        const((D, D_FF)), const((1, D_FF)),               # W1, b1
        const((D_FF, D)), const((1, D)),                  # W2, b2
    ]

    kernel = functools.partial(
        transformer_block_kernel,
        seq=S, n_heads=N_HEADS, head_dim=HEAD_DIM, matmul_dtype=matmul_dtype,
    )

    out2 = pl.pallas_call(
        kernel,
        out_shape=jax.ShapeDtypeStruct((B * S, D), x.dtype),
        grid_spec=pltpu.PrefetchScalarGridSpec(
            num_scalar_prefetch=0,
            grid=grid,
            in_specs=in_specs,
            out_specs=pl.BlockSpec((R_BLK, D), lambda b: (b, 0)),
        ),
        compiler_params=pltpu.CompilerParams(
            dimension_semantics=("parallel",),
            vmem_limit_bytes=vmem_limit,
        ),
    )(
        x2,
        params["ln1_g"], params["ln1_b"],
        params["wq"], params["bq"],
        params["wk"], params["bk"],
        params["wv"], params["bv"],
        params["wo"], params["bo"],
        params["ln2_g"], params["ln2_b"],
        params["w1"], params["b1"],
        params["w2"], params["b2"],
    )
    return out2.reshape(B, S, D)


def init_params(key):
    ks = jax.random.split(key, 6)
    s = 0.02
    return {
        "ln1_g": jnp.ones((1, D_MODEL), jnp.float32),
        "ln1_b": jnp.zeros((1, D_MODEL), jnp.float32),
        "wq": s * jax.random.normal(ks[0], (D_MODEL, D_MODEL), jnp.float32),
        "bq": jnp.zeros((1, D_MODEL), jnp.float32),
        "wk": s * jax.random.normal(ks[1], (D_MODEL, D_MODEL), jnp.float32),
        "bk": jnp.zeros((1, D_MODEL), jnp.float32),
        "wv": s * jax.random.normal(ks[2], (D_MODEL, D_MODEL), jnp.float32),
        "bv": jnp.zeros((1, D_MODEL), jnp.float32),
        "wo": s * jax.random.normal(ks[3], (D_MODEL, D_MODEL), jnp.float32),
        "bo": jnp.zeros((1, D_MODEL), jnp.float32),
        "ln2_g": jnp.ones((1, D_MODEL), jnp.float32),
        "ln2_b": jnp.zeros((1, D_MODEL), jnp.float32),
        "w1": s * jax.random.normal(ks[4], (D_MODEL, D_FF), jnp.float32),
        "b1": jnp.zeros((1, D_FF), jnp.float32),
        "w2": s * jax.random.normal(ks[5], (D_FF, D_MODEL), jnp.float32),
        "b2": jnp.zeros((1, D_MODEL), jnp.float32),
    }


def reference_block(x, p):
    def ln(h, g, b):
        mu = jnp.mean(h, axis=-1, keepdims=True)
        var = jnp.mean((h - mu) ** 2, axis=-1, keepdims=True)
        return (h - mu) * jax.lax.rsqrt(var + EPS) * g[0] + b[0]

    B, S, D = x.shape
    h = ln(x, p["ln1_g"], p["ln1_b"])
    q = h @ p["wq"] + p["bq"][0]
    k = h @ p["wk"] + p["bk"][0]
    v = h @ p["wv"] + p["bv"][0]
    q = q.reshape(B, S, N_HEADS, HEAD_DIM).transpose(0, 2, 1, 3)
    k = k.reshape(B, S, N_HEADS, HEAD_DIM).transpose(0, 2, 1, 3)
    v = v.reshape(B, S, N_HEADS, HEAD_DIM).transpose(0, 2, 1, 3)
    s = jnp.einsum("bhqd,bhkd->bhqk", q, k) / jnp.sqrt(jnp.float32(HEAD_DIM))
    mask = jnp.tril(jnp.ones((S, S), bool))
    s = jnp.where(mask, s, -1e30)
    pattn = jax.nn.softmax(s, axis=-1)
    a = jnp.einsum("bhqk,bhkd->bhqd", pattn, v).transpose(0, 2, 1, 3).reshape(B, S, D)
    a = a @ p["wo"] + p["bo"][0]
    x1 = x + a
    h2 = ln(x1, p["ln2_g"], p["ln2_b"])
    ff = jax.nn.gelu(h2 @ p["w1"] + p["b1"][0], approximate=True)
    ff = ff @ p["w2"] + p["b2"][0]
    return x1 + ff


if __name__ == "__main__":
    key = jax.random.PRNGKey(0)
    kx, kp = jax.random.split(key)
    B, S = 2, 8
    x = jax.random.normal(kx, (B, S, D_MODEL), jnp.float32)
    params = init_params(kp)
    kparams = prepare_params(params)     # one-time host-side weight rescale

    ref = reference_block(x, params)

    # f32 MXU operand path: tight tolerance (accounts for approx EUP reciprocal).
    out_f32 = transformer_block(x, kparams, matmul_dtype=jnp.float32)
    out_f32 = jax.block_until_ready(out_f32)
    assert out_f32.shape == (B, S, D_MODEL)
    assert jnp.allclose(out_f32, ref, atol=2e-3, rtol=2e-3), "f32 mismatch vs reference"

    # Default bf16 MXU operand path (recommended on v5e/v6e/v7x): looser tolerance.
    out_bf16 = transformer_block(x, kparams)
    out_bf16 = jax.block_until_ready(out_bf16)
    assert jnp.allclose(out_bf16, ref, atol=3e-2, rtol=3e-2), "bf16 mismatch vs reference"

    print("KERNEL_OK")
</pallas_src>

<mosaic_0001>
module attributes {stable_mosaic.version = 11 : i64} {
  func.func @transformer_block_kernel(%arg0: i32, %arg1: memref<16x32xf32, #tpu.memory_space<vmem>>, %arg2: memref<1x32xf32, #tpu.memory_space<vmem>>, %arg3: memref<1x32xf32, #tpu.memory_space<vmem>>, %arg4: memref<32x32xf32, #tpu.memory_space<vmem>>, %arg5: memref<1x32xf32, #tpu.memory_space<vmem>>, %arg6: memref<32x32xf32, #tpu.memory_space<vmem>>, %arg7: memref<1x32xf32, #tpu.memory_space<vmem>>, %arg8: memref<32x32xf32, #tpu.memory_space<vmem>>, %arg9: memref<1x32xf32, #tpu.memory_space<vmem>>, %arg10: memref<32x32xf32, #tpu.memory_space<vmem>>, %arg11: memref<1x32xf32, #tpu.memory_space<vmem>>, %arg12: memref<1x32xf32, #tpu.memory_space<vmem>>, %arg13: memref<1x32xf32, #tpu.memory_space<vmem>>, %arg14: memref<32x128xf32, #tpu.memory_space<vmem>>, %arg15: memref<1x128xf32, #tpu.memory_space<vmem>>, %arg16: memref<128x32xf32, #tpu.memory_space<vmem>>, %arg17: memref<1x32xf32, #tpu.memory_space<vmem>>, %arg18: memref<16x32xf32, #tpu.memory_space<vmem>>) attributes {dimension_semantics = [#tpu.dimension_semantics<parallel>], iteration_bounds = array<i64: 1>, scalar_prefetch = 0 : i64, scratch_operands = 0 : i64, tpu.core_type = #tpu.core_type<tc>, window_params = [{transform_indices = @transform_0, window_bounds = array<i64: 16, 32>}, {pipeline_mode = #tpu.pipeline_mode<synchronous>, transform_indices = @transform_1, window_bounds = array<i64: 1, 32>}, {pipeline_mode = #tpu.pipeline_mode<synchronous>, transform_indices = @transform_2, window_bounds = array<i64: 1, 32>}, {pipeline_mode = #tpu.pipeline_mode<synchronous>, transform_indices = @transform_3, window_bounds = array<i64: 32, 32>}, {pipeline_mode = #tpu.pipeline_mode<synchronous>, transform_indices = @transform_4, window_bounds = array<i64: 1, 32>}, {pipeline_mode = #tpu.pipeline_mode<synchronous>, transform_indices = @transform_5, window_bounds = array<i64: 32, 32>}, {pipeline_mode = #tpu.pipeline_mode<synchronous>, transform_indices = @transform_6, window_bounds = array<i64: 1, 32>}, {pipeline_mode = #tpu.pipeline_mode<synchronous>, transform_indices = @transform_7, window_bounds = array<i64: 32, 32>}, {pipeline_mode = #tpu.pipeline_mode<synchronous>, transform_indices = @transform_8, window_bounds = array<i64: 1, 32>}, {pipeline_mode = #tpu.pipeline_mode<synchronous>, transform_indices = @transform_9, window_bounds = array<i64: 32, 32>}, {pipeline_mode = #tpu.pipeline_mode<synchronous>, transform_indices = @transform_10, window_bounds = array<i64: 1, 32>}, {pipeline_mode = #tpu.pipeline_mode<synchronous>, transform_indices = @transform_11, window_bounds = array<i64: 1, 32>}, {pipeline_mode = #tpu.pipeline_mode<synchronous>, transform_indices = @transform_12, window_bounds = array<i64: 1, 32>}, {pipeline_mode = #tpu.pipeline_mode<synchronous>, transform_indices = @transform_13, window_bounds = array<i64: 32, 128>}, {pipeline_mode = #tpu.pipeline_mode<synchronous>, transform_indices = @transform_14, window_bounds = array<i64: 1, 128>}, {pipeline_mode = #tpu.pipeline_mode<synchronous>, transform_indices = @transform_15, window_bounds = array<i64: 128, 32>}, {pipeline_mode = #tpu.pipeline_mode<synchronous>, transform_indices = @transform_16, window_bounds = array<i64: 1, 32>}, {transform_indices = @transform_17, window_bounds = array<i64: 16, 32>}]} {
    %c0 = arith.constant 0 : index
    %c0_0 = arith.constant 0 : index
    %0 = vector.load %arg1[%c0, %c0_0] : memref<16x32xf32, #tpu.memory_space<vmem>>, vector<16x32xf32>
    %c0_1 = arith.constant 0 : index
    %c0_2 = arith.constant 0 : index
    %1 = vector.load %arg2[%c0_1, %c0_2] : memref<1x32xf32, #tpu.memory_space<vmem>>, vector<1x32xf32>
    %c0_3 = arith.constant 0 : index
    %c0_4 = arith.constant 0 : index
    %2 = vector.load %arg3[%c0_3, %c0_4] : memref<1x32xf32, #tpu.memory_space<vmem>>, vector<1x32xf32>
    %cst = arith.constant dense<0.000000e+00> : vector<16xf32>
    %3 = vector.multi_reduction <add>, %0, %cst [1] : vector<16x32xf32> to vector<16xf32>
    %4 = vector.shape_cast %3 : vector<16xf32> to vector<16x1xf32>
    %cst_5 = arith.constant 3.200000e+01 : f32
    %5 = vector.broadcast %cst_5 : f32 to vector<16x1xf32>
    %6 = arith.divf %4, %5 : vector<16x1xf32>
    %7 = vector.broadcast %6 : vector<16x1xf32> to vector<16x32xf32>
    %8 = arith.subf %0, %7 : vector<16x32xf32>
    %9 = arith.mulf %8, %8 : vector<16x32xf32>
    %cst_6 = arith.constant dense<0.000000e+00> : vector<16xf32>
    %10 = vector.multi_reduction <add>, %9, %cst_6 [1] : vector<16x32xf32> to vector<16xf32>
    %11 = vector.shape_cast %10 : vector<16xf32> to vector<16x1xf32>
    %cst_7 = arith.constant 3.200000e+01 : f32
    %12 = vector.broadcast %cst_7 : f32 to vector<16x1xf32>
    %13 = arith.divf %11, %12 : vector<16x1xf32>
    %14 = vector.broadcast %6 : vector<16x1xf32> to vector<16x32xf32>
    %15 = arith.subf %0, %14 : vector<16x32xf32>
    %cst_8 = arith.constant 9.99999974E-6 : f32
    %16 = vector.broadcast %cst_8 : f32 to vector<16x1xf32>
    %17 = arith.addf %13, %16 : vector<16x1xf32>
    %18 = math.rsqrt %17 : vector<16x1xf32>
    %19 = vector.broadcast %18 : vector<16x1xf32> to vector<16x32xf32>
    %20 = arith.mulf %15, %19 : vector<16x32xf32>
    %21 = vector.broadcast %1 : vector<1x32xf32> to vector<16x32xf32>
    %22 = arith.mulf %20, %21 : vector<16x32xf32>
    %23 = vector.broadcast %2 : vector<1x32xf32> to vector<16x32xf32>
    %24 = arith.addf %22, %23 : vector<16x32xf32>
    %c0_9 = arith.constant 0 : index
    %c0_10 = arith.constant 0 : index
    %25 = vector.load %arg4[%c0_9, %c0_10] : memref<32x32xf32, #tpu.memory_space<vmem>>, vector<32x32xf32>
    %cst_11 = arith.constant dense<0.000000e+00> : vector<16x32xf32>
    %26 = tpu.matmul %24, %25, %cst_11 {dimension_numbers = #tpu.dot_dimension_numbers<[1], [0], [0], [1], [0, 0, 1, 1], [], []>} : vector<16x32xf32>, vector<32x32xf32>, vector<16x32xf32> -> vector<16x32xf32>
    %c0_12 = arith.constant 0 : index
    %c0_13 = arith.constant 0 : index
    %27 = vector.load %arg5[%c0_12, %c0_13] : memref<1x32xf32, #tpu.memory_space<vmem>>, vector<1x32xf32>
    %28 = vector.broadcast %27 : vector<1x32xf32> to vector<16x32xf32>
    %29 = arith.addf %26, %28 : vector<16x32xf32>
    %c0_14 = arith.constant 0 : index
    %c0_15 = arith.constant 0 : index
    %30 = vector.load %arg6[%c0_14, %c0_15] : memref<32x32xf32, #tpu.memory_space<vmem>>, vector<32x32xf32>
    %cst_16 = arith.constant dense<0.000000e+00> : vector<16x32xf32>
    %31 = tpu.matmul %24, %30, %cst_16 {dimension_numbers = #tpu.dot_dimension_numbers<[1], [0], [0], [1], [0, 0, 1, 1], [], []>} : vector<16x32xf32>, vector<32x32xf32>, vector<16x32xf32> -> vector<16x32xf32>
    %c0_17 = arith.constant 0 : index
    %c0_18 = arith.constant 0 : index
    %32 = vector.load %arg7[%c0_17, %c0_18] : memref<1x32xf32, #tpu.memory_space<vmem>>, vector<1x32xf32>
    %33 = vector.broadcast %32 : vector<1x32xf32> to vector<16x32xf32>
    %34 = arith.addf %31, %33 : vector<16x32xf32>
    %c0_19 = arith.constant 0 : index
    %c0_20 = arith.constant 0 : index
    %35 = vector.load %arg8[%c0_19, %c0_20] : memref<32x32xf32, #tpu.memory_space<vmem>>, vector<32x32xf32>
    %cst_21 = arith.constant dense<0.000000e+00> : vector<16x32xf32>
    %36 = tpu.matmul %24, %35, %cst_21 {dimension_numbers = #tpu.dot_dimension_numbers<[1], [0], [0], [1], [0, 0, 1, 1], [], []>} : vector<16x32xf32>, vector<32x32xf32>, vector<16x32xf32> -> vector<16x32xf32>
    %c0_22 = arith.constant 0 : index
    %c0_23 = arith.constant 0 : index
    %37 = vector.load %arg9[%c0_22, %c0_23] : memref<1x32xf32, #tpu.memory_space<vmem>>, vector<1x32xf32>
    %38 = vector.broadcast %37 : vector<1x32xf32> to vector<16x32xf32>
    %39 = arith.addf %36, %38 : vector<16x32xf32>
    %40 = vector.shape_cast %29 : vector<16x32xf32> to vector<2x8x32xf32>
    %41 = vector.shape_cast %34 : vector<16x32xf32> to vector<2x8x32xf32>
    %42 = vector.shape_cast %39 : vector<16x32xf32> to vector<2x8x32xf32>
    %43 = vector.extract_strided_slice %40 {offsets = [0, 0, 0], sizes = [2, 8, 8], strides = [1, 1, 1]} : vector<2x8x32xf32> to vector<2x8x8xf32>
    %44 = vector.extract_strided_slice %40 {offsets = [0, 0, 8], sizes = [2, 8, 8], strides = [1, 1, 1]} : vector<2x8x32xf32> to vector<2x8x8xf32>
    %45 = vector.extract_strided_slice %40 {offsets = [0, 0, 16], sizes = [2, 8, 8], strides = [1, 1, 1]} : vector<2x8x32xf32> to vector<2x8x8xf32>
    %46 = vector.extract_strided_slice %40 {offsets = [0, 0, 24], sizes = [2, 8, 8], strides = [1, 1, 1]} : vector<2x8x32xf32> to vector<2x8x8xf32>
    %47 = tpu.concatenate %43, %44, %45, %46 in 0 : vector<2x8x8xf32>, vector<2x8x8xf32>, vector<2x8x8xf32>, vector<2x8x8xf32> -> vector<8x8x8xf32>
    %48 = vector.extract_strided_slice %41 {offsets = [0, 0, 0], sizes = [2, 8, 8], strides = [1, 1, 1]} : vector<2x8x32xf32> to vector<2x8x8xf32>
    %49 = vector.extract_strided_slice %41 {offsets = [0, 0, 8], sizes = [2, 8, 8], strides = [1, 1, 1]} : vector<2x8x32xf32> to vector<2x8x8xf32>
    %50 = vector.extract_strided_slice %41 {offsets = [0, 0, 16], sizes = [2, 8, 8], strides = [1, 1, 1]} : vector<2x8x32xf32> to vector<2x8x8xf32>
    %51 = vector.extract_strided_slice %41 {offsets = [0, 0, 24], sizes = [2, 8, 8], strides = [1, 1, 1]} : vector<2x8x32xf32> to vector<2x8x8xf32>
    %52 = tpu.concatenate %48, %49, %50, %51 in 0 : vector<2x8x8xf32>, vector<2x8x8xf32>, vector<2x8x8xf32>, vector<2x8x8xf32> -> vector<8x8x8xf32>
    %53 = vector.extract_strided_slice %42 {offsets = [0, 0, 0], sizes = [2, 8, 8], strides = [1, 1, 1]} : vector<2x8x32xf32> to vector<2x8x8xf32>
    %54 = vector.extract_strided_slice %42 {offsets = [0, 0, 8], sizes = [2, 8, 8], strides = [1, 1, 1]} : vector<2x8x32xf32> to vector<2x8x8xf32>
    %55 = vector.extract_strided_slice %42 {offsets = [0, 0, 16], sizes = [2, 8, 8], strides = [1, 1, 1]} : vector<2x8x32xf32> to vector<2x8x8xf32>
    %56 = vector.extract_strided_slice %42 {offsets = [0, 0, 24], sizes = [2, 8, 8], strides = [1, 1, 1]} : vector<2x8x32xf32> to vector<2x8x8xf32>
    %57 = tpu.concatenate %53, %54, %55, %56 in 0 : vector<2x8x8xf32>, vector<2x8x8xf32>, vector<2x8x8xf32>, vector<2x8x8xf32> -> vector<8x8x8xf32>
    %58 = tpu.iota {dimensions = array<i32: 0>} : vector<8x8xi32>
    %59 = tpu.iota {dimensions = array<i32: 1>} : vector<8x8xi32>
    %60 = arith.cmpi sle, %59, %58 : vector<8x8xi32>
    %61 = vector.shape_cast %60 : vector<8x8xi1> to vector<1x8x8xi1>
    "tpu.trace_start"() <{level = 10 : i32, message = "bqd,bkd->bqk"}> : () -> ()
    %cst_24 = arith.constant dense<0.000000e+00> : vector<8x8x8xf32>
    %62 = tpu.matmul %47, %52, %cst_24 {dimension_numbers = #tpu.dot_dimension_numbers<[2], [2], [1], [1], [0, 0, 0, 1, 1, 1], [0], [0]>} : vector<8x8x8xf32>, vector<8x8x8xf32>, vector<8x8x8xf32> -> vector<8x8x8xf32>
    %cst_25 = arith.constant -1.000000e+30 : f32
    "tpu.trace_stop"() : () -> ()
    %63 = vector.shape_cast %61 : vector<1x8x8xi1> to vector<1x8x8xi1>
    %64 = vector.broadcast %63 : vector<1x8x8xi1> to vector<8x8x8xi1>
    %65 = vector.broadcast %cst_25 : f32 to vector<8x8x8xf32>
    %66 = arith.select %64, %62, %65 : vector<8x8x8xi1>, vector<8x8x8xf32>
    %cst_26 = arith.constant dense<0xFF800000> : vector<8x8xf32>
    %67 = vector.multi_reduction <maximumf>, %66, %cst_26 [2] : vector<8x8x8xf32> to vector<8x8xf32>
    %68 = vector.shape_cast %67 : vector<8x8xf32> to vector<8x8x1xf32>
    %69 = vector.broadcast %68 : vector<8x8x1xf32> to vector<8x8x8xf32>
    %70 = arith.subf %66, %69 : vector<8x8x8xf32>
    %71 = math.exp %70 : vector<8x8x8xf32>
    %cst_27 = arith.constant dense<0.000000e+00> : vector<8x8xf32>
    %72 = vector.multi_reduction <add>, %71, %cst_27 [2] : vector<8x8x8xf32> to vector<8x8xf32>
    %73 = vector.shape_cast %72 : vector<8x8xf32> to vector<8x8x1xf32>
    "tpu.trace_start"() <{level = 10 : i32, message = "bqk,bkd->bqd"}> : () -> ()
    %cst_28 = arith.constant dense<0.000000e+00> : vector<8x8x8xf32>
    %74 = tpu.matmul %71, %57, %cst_28 {dimension_numbers = #tpu.dot_dimension_numbers<[2], [1], [1], [2], [0, 0, 0, 1, 1, 2], [0], [0]>} : vector<8x8x8xf32>, vector<8x8x8xf32>, vector<8x8x8xf32> -> vector<8x8x8xf32>
    "tpu.trace_stop"() : () -> ()
    %75 = tpu.reciprocal %73 {approx = true} : vector<8x8x1xf32> -> vector<8x8x1xf32>
    %76 = vector.broadcast %75 : vector<8x8x1xf32> to vector<8x8x8xf32>
    %77 = arith.mulf %74, %76 : vector<8x8x8xf32>
    %78 = vector.extract_strided_slice %77 {offsets = [0, 0, 0], sizes = [2, 8, 8], strides = [1, 1, 1]} : vector<8x8x8xf32> to vector<2x8x8xf32>
    %79 = vector.shape_cast %78 : vector<2x8x8xf32> to vector<16x8xf32>
    %80 = vector.extract_strided_slice %77 {offsets = [2, 0, 0], sizes = [2, 8, 8], strides = [1, 1, 1]} : vector<8x8x8xf32> to vector<2x8x8xf32>
    %81 = vector.shape_cast %80 : vector<2x8x8xf32> to vector<16x8xf32>
    %82 = vector.extract_strided_slice %77 {offsets = [4, 0, 0], sizes = [2, 8, 8], strides = [1, 1, 1]} : vector<8x8x8xf32> to vector<2x8x8xf32>
    %83 = vector.shape_cast %82 : vector<2x8x8xf32> to vector<16x8xf32>
    %84 = vector.extract_strided_slice %77 {offsets = [6, 0, 0], sizes = [2, 8, 8], strides = [1, 1, 1]} : vector<8x8x8xf32> to vector<2x8x8xf32>
    %85 = vector.shape_cast %84 : vector<2x8x8xf32> to vector<16x8xf32>
    %86 = tpu.concatenate %79, %81, %83, %85 in 1 : vector<16x8xf32>, vector<16x8xf32>, vector<16x8xf32>, vector<16x8xf32> -> vector<16x32xf32>
    %c0_29 = arith.constant 0 : index
    %c0_30 = arith.constant 0 : index
    %87 = vector.load %arg10[%c0_29, %c0_30] : memref<32x32xf32, #tpu.memory_space<vmem>>, vector<32x32xf32>
    %cst_31 = arith.constant dense<0.000000e+00> : vector<16x32xf32>
    %88 = tpu.matmul %86, %87, %cst_31 {dimension_numbers = #tpu.dot_dimension_numbers<[1], [0], [0], [1], [0, 0, 1, 1], [], []>} : vector<16x32xf32>, vector<32x32xf32>, vector<16x32xf32> -> vector<16x32xf32>
    %c0_32 = arith.constant 0 : index
    %c0_33 = arith.constant 0 : index
    %89 = vector.load %arg11[%c0_32, %c0_33] : memref<1x32xf32, #tpu.memory_space<vmem>>, vector<1x32xf32>
    %90 = vector.broadcast %89 : vector<1x32xf32> to vector<16x32xf32>
    %91 = arith.addf %88, %90 : vector<16x32xf32>
    %92 = arith.addf %0, %91 : vector<16x32xf32>
    %c0_34 = arith.constant 0 : index
    %c0_35 = arith.constant 0 : index
    %93 = vector.load %arg12[%c0_34, %c0_35] : memref<1x32xf32, #tpu.memory_space<vmem>>, vector<1x32xf32>
    %c0_36 = arith.constant 0 : index
    %c0_37 = arith.constant 0 : index
    %94 = vector.load %arg13[%c0_36, %c0_37] : memref<1x32xf32, #tpu.memory_space<vmem>>, vector<1x32xf32>
    %cst_38 = arith.constant dense<0.000000e+00> : vector<16xf32>
    %95 = vector.multi_reduction <add>, %92, %cst_38 [1] : vector<16x32xf32> to vector<16xf32>
    %96 = vector.shape_cast %95 : vector<16xf32> to vector<16x1xf32>
    %cst_39 = arith.constant 3.200000e+01 : f32
    %97 = vector.broadcast %cst_39 : f32 to vector<16x1xf32>
    %98 = arith.divf %96, %97 : vector<16x1xf32>
    %99 = vector.broadcast %98 : vector<16x1xf32> to vector<16x32xf32>
    %100 = arith.subf %92, %99 : vector<16x32xf32>
    %101 = arith.mulf %100, %100 : vector<16x32xf32>
    %cst_40 = arith.constant dense<0.000000e+00> : vector<16xf32>
    %102 = vector.multi_reduction <add>, %101, %cst_40 [1] : vector<16x32xf32> to vector<16xf32>
    %103 = vector.shape_cast %102 : vector<16xf32> to vector<16x1xf32>
    %cst_41 = arith.constant 3.200000e+01 : f32
    %104 = vector.broadcast %cst_41 : f32 to vector<16x1xf32>
    %105 = arith.divf %103, %104 : vector<16x1xf32>
    %106 = vector.broadcast %98 : vector<16x1xf32> to vector<16x32xf32>
    %107 = arith.subf %92, %106 : vector<16x32xf32>
    %cst_42 = arith.constant 9.99999974E-6 : f32
    %108 = vector.broadcast %cst_42 : f32 to vector<16x1xf32>
    %109 = arith.addf %105, %108 : vector<16x1xf32>
    %110 = math.rsqrt %109 : vector<16x1xf32>
    %111 = vector.broadcast %110 : vector<16x1xf32> to vector<16x32xf32>
    %112 = arith.mulf %107, %111 : vector<16x32xf32>
    %113 = vector.broadcast %93 : vector<1x32xf32> to vector<16x32xf32>
    %114 = arith.mulf %112, %113 : vector<16x32xf32>
    %115 = vector.broadcast %94 : vector<1x32xf32> to vector<16x32xf32>
    %116 = arith.addf %114, %115 : vector<16x32xf32>
    %c0_43 = arith.constant 0 : index
    %c0_44 = arith.constant 0 : index
    %117 = vector.load %arg14[%c0_43, %c0_44] : memref<32x128xf32, #tpu.memory_space<vmem>>, vector<32x128xf32>
    %cst_45 = arith.constant dense<0.000000e+00> : vector<16x128xf32>
    %118 = tpu.matmul %116, %117, %cst_45 {dimension_numbers = #tpu.dot_dimension_numbers<[1], [0], [0], [1], [0, 0, 1, 1], [], []>} : vector<16x32xf32>, vector<32x128xf32>, vector<16x128xf32> -> vector<16x128xf32>
    %c0_46 = arith.constant 0 : index
    %c0_47 = arith.constant 0 : index
    %119 = vector.load %arg15[%c0_46, %c0_47] : memref<1x128xf32, #tpu.memory_space<vmem>>, vector<1x128xf32>
    %120 = vector.broadcast %119 : vector<1x128xf32> to vector<16x128xf32>
    %121 = arith.addf %118, %120 : vector<16x128xf32>
    %122 = arith.mulf %121, %121 : vector<16x128xf32>
    %123 = arith.mulf %121, %122 : vector<16x128xf32>
    %cst_48 = arith.constant 4.471500e-02 : f32
    %124 = vector.broadcast %cst_48 : f32 to vector<16x128xf32>
    %125 = arith.mulf %124, %123 : vector<16x128xf32>
    %126 = arith.addf %121, %125 : vector<16x128xf32>
    %cst_49 = arith.constant 0.797884583 : f32
    %127 = vector.broadcast %cst_49 : f32 to vector<16x128xf32>
    %128 = arith.mulf %127, %126 : vector<16x128xf32>
    %129 = math.tanh %128 : vector<16x128xf32>
    %cst_50 = arith.constant 1.000000e+00 : f32
    %130 = vector.broadcast %cst_50 : f32 to vector<16x128xf32>
    %131 = arith.addf %130, %129 : vector<16x128xf32>
    %cst_51 = arith.constant 5.000000e-01 : f32
    %132 = vector.broadcast %cst_51 : f32 to vector<16x128xf32>
    %133 = arith.mulf %132, %131 : vector<16x128xf32>
    %134 = arith.mulf %121, %133 : vector<16x128xf32>
    %c0_52 = arith.constant 0 : index
    %c0_53 = arith.constant 0 : index
    %135 = vector.load %arg16[%c0_52, %c0_53] : memref<128x32xf32, #tpu.memory_space<vmem>>, vector<128x32xf32>
    %cst_54 = arith.constant dense<0.000000e+00> : vector<16x32xf32>
    %136 = tpu.matmul %134, %135, %cst_54 {dimension_numbers = #tpu.dot_dimension_numbers<[1], [0], [0], [1], [0, 0, 1, 1], [], []>} : vector<16x128xf32>, vector<128x32xf32>, vector<16x32xf32> -> vector<16x32xf32>
    %c0_55 = arith.constant 0 : index
    %c0_56 = arith.constant 0 : index
    %137 = vector.load %arg17[%c0_55, %c0_56] : memref<1x32xf32, #tpu.memory_space<vmem>>, vector<1x32xf32>
    %138 = vector.broadcast %137 : vector<1x32xf32> to vector<16x32xf32>
    %139 = arith.addf %136, %138 : vector<16x32xf32>
    %140 = arith.addf %92, %139 : vector<16x32xf32>
    %c0_57 = arith.constant 0 : index
    %c0_58 = arith.constant 0 : index
    %141 = vector.load %arg18[%c0_57, %c0_58] : memref<16x32xf32, #tpu.memory_space<vmem>>, vector<16x32xf32>
    tpu.vector_store %arg18[%c0_57, %c0_58], %140 {strides = array<i32>} : memref<16x32xf32, #tpu.memory_space<vmem>>, vector<16x32xf32>,
    return
  }
  func.func @transform_0(%arg0: i32) -> (i32, i32) {
    %c0_i32 = arith.constant 0 : i32
    %c0_i32_0 = arith.constant 0 : i32
    return %arg0, %c0_i32 : i32, i32
  }
  func.func @transform_1(%arg0: i32) -> (i32, i32) {
    %c0_i32 = arith.constant 0 : i32
    %c0_i32_0 = arith.constant 0 : i32
    %c0_i32_1 = arith.constant 0 : i32
    return %c0_i32, %c0_i32_0 : i32, i32
  }
  func.func @transform_2(%arg0: i32) -> (i32, i32) {
    %c0_i32 = arith.constant 0 : i32
    %c0_i32_0 = arith.constant 0 : i32
    %c0_i32_1 = arith.constant 0 : i32
    return %c0_i32, %c0_i32_0 : i32, i32
  }
  func.func @transform_3(%arg0: i32) -> (i32, i32) {
    %c0_i32 = arith.constant 0 : i32
    %c0_i32_0 = arith.constant 0 : i32
    %c0_i32_1 = arith.constant 0 : i32
    return %c0_i32, %c0_i32_0 : i32, i32
  }
  func.func @transform_4(%arg0: i32) -> (i32, i32) {
    %c0_i32 = arith.constant 0 : i32
    %c0_i32_0 = arith.constant 0 : i32
    %c0_i32_1 = arith.constant 0 : i32
    return %c0_i32, %c0_i32_0 : i32, i32
  }
  func.func @transform_5(%arg0: i32) -> (i32, i32) {
    %c0_i32 = arith.constant 0 : i32
    %c0_i32_0 = arith.constant 0 : i32
    %c0_i32_1 = arith.constant 0 : i32
    return %c0_i32, %c0_i32_0 : i32, i32
  }
  func.func @transform_6(%arg0: i32) -> (i32, i32) {
    %c0_i32 = arith.constant 0 : i32
    %c0_i32_0 = arith.constant 0 : i32
    %c0_i32_1 = arith.constant 0 : i32
    return %c0_i32, %c0_i32_0 : i32, i32
  }
  func.func @transform_7(%arg0: i32) -> (i32, i32) {
    %c0_i32 = arith.constant 0 : i32
    %c0_i32_0 = arith.constant 0 : i32
    %c0_i32_1 = arith.constant 0 : i32
    return %c0_i32, %c0_i32_0 : i32, i32
  }
  func.func @transform_8(%arg0: i32) -> (i32, i32) {
    %c0_i32 = arith.constant 0 : i32
    %c0_i32_0 = arith.constant 0 : i32
    %c0_i32_1 = arith.constant 0 : i32
    return %c0_i32, %c0_i32_0 : i32, i32
  }
  func.func @transform_9(%arg0: i32) -> (i32, i32) {
    %c0_i32 = arith.constant 0 : i32
    %c0_i32_0 = arith.constant 0 : i32
    %c0_i32_1 = arith.constant 0 : i32
    return %c0_i32, %c0_i32_0 : i32, i32
  }
  func.func @transform_10(%arg0: i32) -> (i32, i32) {
    %c0_i32 = arith.constant 0 : i32
    %c0_i32_0 = arith.constant 0 : i32
    %c0_i32_1 = arith.constant 0 : i32
    return %c0_i32, %c0_i32_0 : i32, i32
  }
  func.func @transform_11(%arg0: i32) -> (i32, i32) {
    %c0_i32 = arith.constant 0 : i32
    %c0_i32_0 = arith.constant 0 : i32
    %c0_i32_1 = arith.constant 0 : i32
    return %c0_i32, %c0_i32_0 : i32, i32
  }
  func.func @transform_12(%arg0: i32) -> (i32, i32) {
    %c0_i32 = arith.constant 0 : i32
    %c0_i32_0 = arith.constant 0 : i32
    %c0_i32_1 = arith.constant 0 : i32
    return %c0_i32, %c0_i32_0 : i32, i32
  }
  func.func @transform_13(%arg0: i32) -> (i32, i32) {
    %c0_i32 = arith.constant 0 : i32
    %c0_i32_0 = arith.constant 0 : i32
    %c0_i32_1 = arith.constant 0 : i32
    return %c0_i32, %c0_i32_0 : i32, i32
  }
  func.func @transform_14(%arg0: i32) -> (i32, i32) {
    %c0_i32 = arith.constant 0 : i32
    %c0_i32_0 = arith.constant 0 : i32
    %c0_i32_1 = arith.constant 0 : i32
    return %c0_i32, %c0_i32_0 : i32, i32
  }
  func.func @transform_15(%arg0: i32) -> (i32, i32) {
    %c0_i32 = arith.constant 0 : i32
    %c0_i32_0 = arith.constant 0 : i32
    %c0_i32_1 = arith.constant 0 : i32
    return %c0_i32, %c0_i32_0 : i32, i32
  }
  func.func @transform_16(%arg0: i32) -> (i32, i32) {
    %c0_i32 = arith.constant 0 : i32
    %c0_i32_0 = arith.constant 0 : i32
    %c0_i32_1 = arith.constant 0 : i32
    return %c0_i32, %c0_i32_0 : i32, i32
  }
  func.func @transform_17(%arg0: i32) -> (i32, i32) {
    %c0_i32 = arith.constant 0 : i32
    %c0_i32_0 = arith.constant 0 : i32
    return %arg0, %c0_i32 : i32, i32
  }
}

</mosaic_0001>

<bundles_post_ra>
// kernel: tpu_custom_call.1
= control target key start
LH: loop header
LB: loop body
LE: loop exit
PB: predicated region body
PF: predicated region fallthrough
CT: control target
= control target key end

     0   :  { %s2946_s0 = inlined_call_operand.hbm [shape: f32[16,32], index: 0, kind: input, shape index: {}]   ;;  %s2947_s1 = inlined_call_operand.vmem [shape: f32[1,32], index: 1, kind: input, shape index: {}]   ;;  %s2948_s2 = inlined_call_operand.vmem [shape: f32[1,32], index: 2, kind: input, shape index: {}]   ;;  %s2949_s3 = inlined_call_operand.vmem [shape: f32[32,32], index: 3, kind: input, shape index: {}]   ;;  %s2950_s4 = inlined_call_operand.vmem [shape: f32[1,32], index: 4, kind: input, shape index: {}]   ;;  %s2951_s5 = inlined_call_operand.vmem [shape: f32[32,32], index: 5, kind: input, shape index: {}]   ;;  %s2952_s6 = inlined_call_operand.vmem [shape: f32[1,32], index: 6, kind: input, shape index: {}]   ;;  %s2953_s7 = inlined_call_operand.vmem [shape: f32[32,32], index: 7, kind: input, shape index: {}]   ;;  %s2954_s8 = inlined_call_operand.vmem [shape: f32[1,32], index: 8, kind: input, shape index: {}]   ;;  %s2955_s9 = inlined_call_operand.vmem [shape: f32[32,32], index: 9, kind: input, shape index: {}]   ;;  %s2956_s10 = inlined_call_operand.vmem [shape: f32[1,32], index: 10, kind: input, shape index: {}]   ;;  %s2957_s11 = inlined_call_operand.vmem [shape: f32[1,32], index: 11, kind: input, shape index: {}]   ;;  %s2958_s12 = inlined_call_operand.vmem [shape: f32[1,32], index: 12, kind: input, shape index: {}]   ;;  %s2959_s13 = inlined_call_operand.vmem [shape: f32[32,128], index: 13, kind: input, shape index: {}]   ;;  %s2960_s14 = inlined_call_operand.vmem [shape: f32[1,128], index: 14, kind: input, shape index: {}]   ;;  %s2961_s15 = inlined_call_operand.vmem [shape: f32[128,32], index: 15, kind: input, shape index: {}]   ;;  %s2962_s16 = inlined_call_operand.vmem [shape: f32[1,32], index: 16, kind: input, shape index: {}]   ;;  %s2963_s17 = inlined_call_operand.hbm [shape: f32[16,32], index: 17, kind: output, shape index: {}]  }
   0x1   :  { %2964 = sst [smem:[#allocation8_spill]] %s2946_s0 }
   0x2   :  { %2965 = sst [smem:[#allocation9_spill]] %s2947_s1 }
   0x3   :  { %22 = vsyncpa [#allocation3], 0 }
   0x4   :  { %23 = vsyncpa [#allocation4], 0  ;;  %s2503_s24 = smov [#allocation2]  }
   0x5   :  { %s29_s25 = sshll.u32 %s2503_s24, 4  ;;  %s30_s25 = int_to_ptr.vmem [resolvable:$true] %s29_s25 }
   0x6   :  { %s2467_s26 = scalar_lea.vmem %s30_s25, 256  ;;  %p2472_p1 = scmp.lt.s32.totalorder %s30_s25, %s30_s25 }
   0x7   :  { %p2468_p0 = scmp.ne.s32.totalorder %s30_s25, %s2467_s26  ;;  %p2473_p2 = scmp.lt.s32.totalorder %s2467_s26, %s2467_s26 }
   0x9   :  { %p2474_p3 = por %p2473_p2, %p2472_p1 }
   0xb   :  { %p2475_p4 = pnand %p2474_p3, %p2468_p0 }
   0xd   :  { %2478 = shalt.err (!%p2475_p4)
}
   0xe   :  { %s2504_s27 = smov 128   ;;  %s2505_s28 = smov 8  }
   0xf   :  { %s2966_s30 = sld [smem:[#allocation8_spill]] }
  0x15   :  { %35 = dma.hbm_to_vmem [thread:$0]  %s2966_s30, 256, %s30_s25, [#allocation3], %s2504_s27, %s2504_s27, %s2505_s28  }
  0x16   :  { %2499 = dma.done.wait [#allocation3], 256  }
  0x17   :  { %2500 = vsyncadd [#allocation3], 4294967040  ;;  %vm75_vm0 = vcmask 261120   ;;  %v2610_v0 = vld [vmem:[#allocation2] sm:$0xff]  ;;  %v2612_v1 = vld [vmem:[#allocation2 + $0x8] sm:$0xff]  ;;  %s2967_s30 = sld [smem:[#allocation9_spill]] }
  0x18   :  { %v76_v2 = vsel %vm75_vm0, %v2610_v0, 0.0  ;;  %v79_v3 = vsel %vm75_vm0, %v2612_v1, 0.0  ;;  %v122_v14 = vld [vmem:[%s2949_s3 + $0x18] sm:$0xff]  ;;  %v121_v15 = vld [vmem:[%s2949_s3 + $0x10] sm:$0xff]  ;;  %v120_v16 = vld [vmem:[%s2949_s3 + $0x8] sm:$0xff]  ;;  %v2506_v42 = vmov 0.0  }
  0x19   :  { %77 = vadd.xlane.f32.xlu0 %v76_v2  ;;  %2234 = vmatprep.subr.mxu1 %v122_v14  ;;  %v119_v17 = vld [vmem:[%s2949_s3] sm:$0xff]  ;;  %v214_v18 = vld [vmem:[%s2951_s5 + $0x18] sm:$0xff]  ;;  %v213_v35 = vld [vmem:[%s2951_s5 + $0x10] sm:$0xff]  ;;  %vm2507_vm1 = vmmov 0   ;;  %s2508_s18 = smov 120   ;;  %s2509_s19 = smov 112  }
  0x1a   :  { %2235 = vmatpush3.msra.mxu1 %v122_v14  ;;  %v2111_v28 = vld [vmem:[%s2948_s2] ss:$0 sm:$0xff]  ;;  %v212_v36 = vld [vmem:[%s2951_s5 + $0x8] sm:$0xff]  ;;  %v300_v38 = vld [vmem:[%s2953_s7 + $0x18] sm:$0xff]  ;;  %2277 = vmatprep.subr.mxu0 %v2506_v42  ;;  %vm436_vm2 = vcmask 64512   ;;  %vm1737_vm4 = vcmask 130048  }
  0x1b   :  { %2236 = vmatprep.subr.mxu1 %v121_v15  ;;  %v211_v37 = vld [vmem:[%s2951_s5] sm:$0xff]  ;;  %v299_v39 = vld [vmem:[%s2953_s7 + $0x10] sm:$0xff]  ;;  %v298_v40 = vld [vmem:[%s2953_s7 + $0x8] sm:$0xff]  ;;  %2279 = vmatprep.mubr.msk.f32.mxu0 %vm2507_vm1, %v2506_v42  ;;  %s2511_s5 = smov 16   ;;  %vm1740_vm5 = vcmask 195584  }
  0x1c   :  { %2237 = vmatpush3.msra.mxu1 %v121_v15  ;;  %v297_v41 = vld [vmem:[%s2953_s7] sm:$0xff] }
  0x1d   :  { %80 = vadd.xlane.f32.xlu0 %v79_v3  ;;  %2238 = vmatprep.subr.mxu1 %v120_v16  ;;  %v2110_v26 = vld [vmem:[%s2967_s30] ss:$0 sm:$0xff] }
  0x1e   :  { %2239 = vmatpush3.msra.mxu1 %v120_v16  ;;  %v2112_v43 = vld [vmem:[%s2950_s4] ss:$0 sm:$0xff]  ;;  %s2510_s4 = smov 104  }
  0x1f   :  { %2240 = vmatprep.subr.mxu1 %v119_v17  ;;  %v2115_v49 = vld [vmem:[%s2952_s6] ss:$0 sm:$0xff] }
  0x20   :  { %2241 = vmatpush3.msra.mxu1 %v119_v17  ;;  %v2118_v55 = vld [vmem:[%s2954_s8] ss:$0 sm:$0xff] }
  0x21   :  { %2245 = vmatprep.subr.mxu1 %v214_v18 }
  0xa2   :  { %v78_v4 = vpop.xlane.xlu0 %77 }
  0xa3   :  { %v83_v5 = vmul.f32 0.03125, %v78_v4 }
  0xa5   :  { %v85_v6 = vsub.f32 %v2610_v0, %v83_v5 }
  0xa6   :  { %v81_v7 = vpop.xlane.xlu0 %80 }
  0xa7   :  { %v84_v8 = vmul.f32 0.03125, %v81_v7  ;;  %v87_v9 = vmul.f32 %v85_v6, %v85_v6 }
  0xa9   :  { %v86_v10 = vsub.f32 %v2612_v1, %v84_v8  ;;  %v89_v11 = vsel %vm75_vm0, %v87_v9, 0.0  ;;  %v431_v8 = vlaneseq }
  0xaa   :  { %90 = vadd.xlane.f32.xlu1 %v89_v11 }
  0xab   :  { %v88_v12 = vmul.f32 %v86_v10, %v86_v10  ;;  %v432_v9 = vshrl.u32 %v431_v8, 7 }
  0xad   :  { %v92_v13 = vsel %vm75_vm0, %v88_v12, 0.0 }
  0xae   :  { %93 = vadd.xlane.f32.xlu1 %v92_v13 }
 0x133   :  { %v91_v19 = vpop.xlane.xlu1 %90 }
 0x134   :  { %v95_v20 = vmul.f32 0.03125, %v91_v19 }
 0x136   :  { %v97_v21 = vadd.f32 1e-05, %v95_v20 }
 0x137   :  { %v94_v22 = vpop.xlane.xlu1 %93 }
 0x138   :  { %2415 = vrsqrt.f32 %v97_v21  ;;  %v96_v23 = vmul.f32 0.03125, %v94_v22 }
 0x13a   :  { %v98_v24 = vadd.f32 1e-05, %v96_v23 }
 0x13c   :  { %2417 = vrsqrt.f32 %v98_v24 }
 0x145   :  { %v2416_v25 = vpop.eup %2415 }
 0x146   :  { %v101_v27 = vmul.f32 %v2416_v25, %v85_v6 }
 0x148   :  { %v109_v29 = vmul.f32 %v2110_v26, %v101_v27 }
 0x149   :  { %v2418_v30 = vpop.eup %2417 }
 0x14a   :  { %v102_v31 = vmul.f32 %v2418_v30, %v86_v10  ;;  %v117_v32 = vadd.f32 %v2111_v28, %v109_v29  ;;  %v434_v10 = vand.u32 127, %v431_v8 }
 0x14c   :  { %v110_v33 = vmul.f32 %v2110_v26, %v102_v31  ;;  %2242 = vmatprep.mubr.msk.f32.mxu1 %vm75_vm0, %v117_v32  ;;  %vm2753_vm3 = vcmp.le.s32.totalorder %v434_v10, %v432_v9 }
 0x14e   :  { %v118_v34 = vadd.f32 %v2111_v28, %v110_v33 }
 0x150   :  { %2243 = vmatmul.mubr.msk.f32.vlgmr.msra.gmra.mxu1 %vm75_vm0, %v118_v34 }
 0x151   :  { %2246 = vmatpush3.msra.mxu1 %v214_v18  ;;  %2253 = vmatprep.mubr.msk.f32.mxu1 %vm75_vm0, %v117_v32 }
 0x152   :  { %2247 = vmatprep.subr.mxu1 %v213_v35 }
 0x153   :  { %2248 = vmatpush3.msra.mxu1 %v213_v35 }
 0x154   :  { %2249 = vmatprep.subr.mxu1 %v212_v36 }
 0x155   :  { %2250 = vmatpush3.msra.mxu1 %v212_v36 }
 0x156   :  { %2251 = vmatprep.subr.mxu1 %v211_v37 }
 0x157   :  { %2252 = vmatpush3.msra.mxu1 %v211_v37 }
 0x158   :  { %2254 = vmatmul.mubr.msk.f32.vlgmr.msra.gmra.mxu1 %vm75_vm0, %v118_v34  ;;  %2256 = vmatprep.subr.mxu1 %v300_v38 }
 0x159   :  { %2257 = vmatpush3.msra.mxu1 %v300_v38  ;;  %2264 = vmatprep.mubr.msk.f32.mxu1 %vm75_vm0, %v117_v32 }
 0x15a   :  { %2258 = vmatprep.subr.mxu1 %v299_v39 }
 0x15b   :  { %2259 = vmatpush3.msra.mxu1 %v299_v39 }
 0x15c   :  { %2260 = vmatprep.subr.mxu1 %v298_v40 }
 0x15d   :  { %2261 = vmatpush3.msra.mxu1 %v298_v40 }
 0x15e   :  { %2262 = vmatprep.subr.mxu1 %v297_v41 }
 0x15f   :  { %2263 = vmatpush3.msra.mxu1 %v297_v41 }
 0x160   :  { %2265 = vmatmul.mubr.msk.f32.vlgmr.msra.gmra.mxu1 %vm75_vm0, %v118_v34  ;;  %2267 = vmatprep.subr.mxu1 %v2506_v42 }
 0x161   :  { %2269 = vmatprep.mubr.msk.f32.mxu1 %vm2507_vm1, %v2506_v42 }
 0x210   :  { %v2244_v44 = vpop.f32.mrf.mxu1 }
 0x211   :  { %v208_v45 = vadd.f32 %v2244_v44, %v2112_v43 }
 0x212   :  { %v202_v46 = vpop.f32.mrf.mxu1 }
 0x213   :  { %v203_v47 = vadd.f32 %v2112_v43, %v202_v46  ;;  %387 = vrot.lane.b32.xlu1 %v208_v45, %s2508_s18 }
 0x215   :  { %389 = vrot.lane.b32.xlu0 %v203_v47, %s2509_s19 }
 0x217   :  { %391 = vrot.lane.b32.xlu1 %v208_v45, %s2509_s19 }
 0x218   :  { %v2255_v48 = vpop.f32.mrf.mxu1 }
 0x219   :  { %v294_v52 = vadd.f32 %v2255_v48, %v2115_v49 }
 0x21a   :  { %v288_v50 = vpop.f32.mrf.mxu1 }
 0x21b   :  { %v289_v51 = vadd.f32 %v2115_v49, %v288_v50  ;;  %385 = vrot.lane.b32.xlu1 %v203_v47, %s2508_s18 }
 0x21d   :  { %2268 = vmatpush3.xpose.msk.msra.mxu1 %vm436_vm2, %v289_v51  ;;  %399 = vrot.lane.b32.xlu0 %v289_v51, %s2508_s18 }
 0x21e   :  { %2272 = vmatprep.subr.mxu1 %v2506_v42 }
 0x21f   :  { %401 = vrot.lane.b32.xlu1 %v294_v52, %s2508_s18 }
 0x220   :  { %2270 = vmatmul.mubr.msk.f32.vlgmr.msra.gmra.mxu1 %vm436_vm2, %v203_v47  ;;  %v2266_v53 = vpop.f32.mrf.mxu1 }
 0x221   :  { %403 = vrot.lane.b32.xlu0 %v289_v51, %s2509_s19  ;;  %2273 = vmatpush3.xpose.msk.msra.mxu1 %vm436_vm2, %v294_v52  ;;  %v2709_v57 = vadd.f32 %v2266_v53, %v2118_v55 }
 0x222   :  { %2274 = vmatprep.mubr.msk.f32.mxu1 %vm2507_vm1, %v2506_v42  ;;  %2282 = vmatprep.subr.mxu1 %v2506_v42  ;;  %v374_v54 = vpop.f32.mrf.mxu1 }
 0x223   :  { %405 = vrot.lane.b32.xlu1 %v294_v52, %s2509_s19  ;;  %v2706_v56 = vadd.f32 %v2118_v55, %v374_v54 }
 0x224   :  { %2275 = vmatmul.mubr.msk.f32.vlgmr.msra.gmra.mxu1 %vm436_vm2, %v208_v45 }
 0x225   :  { %407 = vrot.lane.b32.xlu0 %v289_v51, %s2510_s4  ;;  %2284 = vmatprep.mubr.msk.f32.mxu1 %vm2507_vm1, %v2506_v42 }
 0x227   :  { %409 = vrot.lane.b32.xlu1 %v294_v52, %s2510_s4 }
 0x229   :  { %393 = vrot.lane.b32.xlu0 %v203_v47, %s2510_s4 }
 0x22b   :  { %395 = vrot.lane.b32.xlu1 %v208_v45, %s2510_s4 }
 0x22d   :  { %413 = vrot.lane.b32.xlu0 %v2706_v56, %s2508_s18 }
 0x22f   :  { %415 = vrot.lane.b32.xlu1 %v2709_v57, %s2508_s18 }
 0x233   :  { %421 = vrot.lane.b32.xlu1 %v2709_v57, %s2509_s19 }
 0x237   :  { %419 = vrot.lane.b32.xlu1 %v2706_v56, %s2509_s19 }
 0x285   :  { %v388_v58 = vpop.permute.xlu1 %387 }
 0x287   :  { %v390_v60 = vpop.permute.xlu0 %389 }
 0x289   :  { %v392_v59 = vpop.permute.xlu1 %391 }
 0x28d   :  { %v386_v61 = vpop.permute.xlu1 %385 }
 0x28f   :  { %v400_v62 = vpop.permute.xlu0 %399 }
 0x290   :  { %2278 = vmatpush3.xpose.msk.msra.mxu0 %vm436_vm2, %v400_v62 }
 0x291   :  { %v402_v63 = vpop.permute.xlu1 %401  ;;  %2287 = vmatprep.subr.mxu0 %v2506_v42 }
 0x292   :  { %2283 = vmatpush3.xpose.msk.msra.mxu1 %vm436_vm2, %v402_v63 }
 0x293   :  { %v404_v2 = vpop.permute.xlu0 %403  ;;  %2280 = vmatmul.mubr.msk.f32.vlgmr.msra.gmra.mxu0 %vm436_vm2, %v386_v61  ;;  %2292 = vmatprep.subr.mxu1 %v2506_v42 }
 0x294   :  { %2288 = vmatpush3.xpose.msk.msra.mxu0 %vm436_vm2, %v404_v2  ;;  %2289 = vmatprep.mubr.msk.f32.mxu0 %vm2507_vm1, %v2506_v42 }
 0x295   :  { %v406_v3 = vpop.permute.xlu1 %405  ;;  %2285 = vmatmul.mubr.msk.f32.vlgmr.msra.gmra.mxu1 %vm436_vm2, %v388_v58  ;;  %2297 = vmatprep.subr.mxu0 %v2506_v42 }
 0x296   :  { %2293 = vmatpush3.xpose.msk.msra.mxu1 %vm436_vm2, %v406_v3  ;;  %2294 = vmatprep.mubr.msk.f32.mxu1 %vm2507_vm1, %v2506_v42 }
 0x297   :  { %v408_v4 = vpop.permute.xlu0 %407  ;;  %2290 = vmatmul.mubr.msk.f32.vlgmr.msra.gmra.mxu0 %vm436_vm2, %v390_v60  ;;  %2302 = vmatprep.subr.mxu1 %v2506_v42 }
 0x298   :  { %2298 = vmatpush3.xpose.msk.msra.mxu0 %vm436_vm2, %v408_v4  ;;  %2299 = vmatprep.mubr.msk.f32.mxu0 %vm2507_vm1, %v2506_v42 }
 0x299   :  { %v410_v5 = vpop.permute.xlu1 %409  ;;  %2295 = vmatmul.mubr.msk.f32.vlgmr.msra.gmra.mxu1 %vm436_vm2, %v392_v59  ;;  %2307 = vmatprep.subr.mxu0 %v2506_v42 }
 0x29a   :  { %2303 = vmatpush3.xpose.msk.msra.mxu1 %vm436_vm2, %v410_v5  ;;  %2304 = vmatprep.mubr.msk.f32.mxu1 %vm2507_vm1, %v2506_v42 }
 0x29b   :  { %v394_v6 = vpop.permute.xlu0 %393  ;;  %2312 = vmatprep.subr.mxu1 %v2506_v42 }
 0x29c   :  { %2300 = vmatmul.mubr.msk.f32.vlgmr.msra.gmra.mxu0 %vm436_vm2, %v394_v6 }
 0x29d   :  { %2308 = vmatpush3.msra.mxu0 %v2706_v56  ;;  %v396_v7 = vpop.permute.xlu1 %395  ;;  %2309 = vmatprep.mubr.msk.f32.mxu0 %vm2507_vm1, %v2506_v42 }
 0x29e   :  { %2305 = vmatmul.mubr.msk.f32.vlgmr.msra.gmra.mxu1 %vm436_vm2, %v396_v7  ;;  %2317 = vmatprep.subr.mxu0 %v2506_v42 }
 0x29f   :  { %2313 = vmatpush3.msra.mxu1 %v2709_v57  ;;  %2314 = vmatprep.mubr.msk.f32.mxu1 %vm2507_vm1, %v2506_v42  ;;  %v414_v47 = vpop.permute.xlu0 %413 }
 0x2a0   :  { %2322 = vmatprep.subr.mxu1 %v2506_v42 }
 0x2a1   :  { %v416_v40 = vpop.permute.xlu1 %415 }
 0x2a5   :  { %v422_v46 = vpop.permute.xlu1 %421 }
 0x2a9   :  { %v420_v48 = vpop.permute.xlu1 %419 }
 0x2e0   :  { %v507_v12 = vpop.f32.mrf.mxu1 }
 0x2e1   :  { %v1031_v13 = vsel %vm2753_vm3, %v507_v12, -1e+30 }
 0x2e2   :  { %v2271_v14 = vpop.f32.mrf.mxu1  ;;  %v1039_v15 = vsel %vm436_vm2, %v1031_v13, -inf }
 0x2e3   :  { %1040 = vmax.xlane.f32.xlu0 %v1039_v15 }
 0x2e4   :  { %v581_v16 = vpop.f32.mrf.mxu1 }
 0x2e5   :  { %v1032_v17 = vsel %vm2753_vm3, %v581_v16, -1e+30 }
 0x2e6   :  { %v2276_v18 = vpop.f32.mrf.mxu1  ;;  %v1042_v19 = vsel %vm436_vm2, %v1032_v17, -inf }
 0x2e7   :  { %1043 = vmax.xlane.f32.xlu1 %v1042_v19 }
 0x353   :  { %v655_v20 = vpop.f32.mrf.mxu0 }
 0x354   :  { %v1033_v27 = vsel %vm2753_vm3, %v655_v20, -1e+30 }
 0x355   :  { %v2281_v21 = vpop.f32.mrf.mxu0  ;;  %v729_v22 = vpop.f32.mrf.mxu1  ;;  %v1045_v32 = vsel %vm436_vm2, %v1033_v27, -inf }
 0x356   :  { %v1034_v23 = vsel %vm2753_vm3, %v729_v22, -1e+30 }
 0x357   :  { %v803_v24 = vpop.f32.mrf.mxu0  ;;  %v2286_v25 = vpop.f32.mrf.mxu1  ;;  %v1048_v26 = vsel %vm436_vm2, %v1034_v23, -inf }
 0x358   :  { %1049 = vmax.xlane.f32.xlu0 %v1048_v26  ;;  %v1035_v34 = vsel %vm2753_vm3, %v803_v24, -1e+30 }
 0x359   :  { %v2291_v28 = vpop.f32.mrf.mxu0  ;;  %v877_v29 = vpop.f32.mrf.mxu1  ;;  %v1051_v39 = vsel %vm436_vm2, %v1035_v34, -inf }
 0x35a   :  { %v1036_v30 = vsel %vm2753_vm3, %v877_v29, -1e+30 }
 0x35b   :  { %v2296_v31 = vpop.f32.mrf.mxu1  ;;  %v1054_v33 = vsel %vm436_vm2, %v1036_v30, -inf }
 0x35c   :  { %v951_v35 = vpop.f32.mrf.mxu0  ;;  %1046 = vmax.xlane.f32.xlu0 %v1045_v32  ;;  %1055 = vmax.xlane.f32.xlu1 %v1054_v33 }
 0x35d   :  { %v1037_v41 = vsel %vm2753_vm3, %v951_v35, -1e+30 }
 0x35e   :  { %v2301_v36 = vpop.f32.mrf.mxu0  ;;  %v1025_v37 = vpop.f32.mrf.mxu1  ;;  %v1057_v45 = vsel %vm436_vm2, %v1037_v41, -inf }
 0x35f   :  { %v1038_v38 = vsel %vm2753_vm3, %v1025_v37, -1e+30  ;;  %v1746_v36 = vld [vmem:[%s2955_s9 + $0x18] sm:$0xff] }
 0x360   :  { %1052 = vmax.xlane.f32.xlu0 %v1051_v39  ;;  %v2306_v43 = vpop.f32.mrf.mxu1  ;;  %v1060_v44 = vsel %vm436_vm2, %v1038_v38, -inf  ;;  %v1745_v39 = vld [vmem:[%s2955_s9 + $0x10] sm:$0xff] }
 0x361   :  { %1061 = vmax.xlane.f32.xlu1 %v1060_v44 }
 0x364   :  { %1058 = vmax.xlane.f32.xlu0 %v1057_v45 }
 0x36c   :  { %v1041_v49 = vpop.xlane.xlu0 %1040 }
 0x36d   :  { %v1063_v50 = vsub.f32 %v1031_v13, %v1041_v49 }
 0x36f   :  { %v1071_v51 = vmul.f32 1.442695, %v1063_v50 }
 0x370   :  { %v1044_v52 = vpop.xlane.xlu1 %1043 }
 0x371   :  { %2419 = vpow2.f32 %v1071_v51  ;;  %v1064_v53 = vsub.f32 %v1032_v17, %v1044_v52 }
 0x372   :  { %427 = vrot.lane.b32.xlu1 %v2709_v57, %s2510_s4 }
 0x373   :  { %v1073_v54 = vmul.f32 1.442695, %v1064_v53 }
 0x375   :  { %2421 = vpow2.f32 %v1073_v54 }
 0x37a   :  { %425 = vrot.lane.b32.xlu0 %v2706_v56, %s2510_s4 }
 0x37e   :  { %v2785_v55 = vpop.eup %2419 }
 0x37f   :  { %2310 = vmatmul.mubr.msk.f32.vlgmr.msra.gmra.mxu0 %vm436_vm2, %v2785_v55  ;;  %v1087_v28 = vsel %vm436_vm2, %v2785_v55, 0.0 }
 0x380   :  { %2318 = vmatpush3.msra.mxu0 %v414_v47  ;;  %2319 = vmatprep.mubr.msk.f32.mxu0 %vm2507_vm1, %v2506_v42 }
 0x381   :  { %2327 = vmatprep.subr.mxu0 %v2506_v42 }
 0x382   :  { %v2422_v58 = vpop.eup %2421 }
 0x383   :  { %2315 = vmatmul.mubr.msk.f32.vlgmr.msra.gmra.mxu1 %vm436_vm2, %v2422_v58  ;;  %v1090_v26 = vsel %vm436_vm2, %v2422_v58, 0.0 }
 0x384   :  { %2323 = vmatpush3.msra.mxu1 %v416_v40  ;;  %2324 = vmatprep.mubr.msk.f32.mxu1 %vm2507_vm1, %v2506_v42  ;;  %v1744_v40 = vld [vmem:[%s2955_s9 + $0x8] sm:$0xff] }
 0x385   :  { %2332 = vmatprep.subr.mxu1 %v2506_v42 }
 0x3e1   :  { %v1050_v56 = vpop.xlane.xlu0 %1049 }
 0x3e2   :  { %v1066_v57 = vsub.f32 %v1034_v23, %v1050_v56 }
 0x3e4   :  { %v1077_v59 = vmul.f32 1.442695, %v1066_v57 }
 0x3e5   :  { %v1047_v60 = vpop.xlane.xlu0 %1046  ;;  %v1056_v61 = vpop.xlane.xlu1 %1055 }
 0x3e6   :  { %2423 = vpow2.f32 %v1077_v59  ;;  %v1065_v62 = vsub.f32 %v1033_v27, %v1047_v60  ;;  %v1068_v63 = vsub.f32 %v1036_v30, %v1056_v61 }
 0x3e8   :  { %v1075_v2 = vmul.f32 1.442695, %v1065_v62  ;;  %v1081_v3 = vmul.f32 1.442695, %v1068_v63 }
 0x3e9   :  { %v1053_v4 = vpop.xlane.xlu0 %1052 }
 0x3ea   :  { %2425 = vpow2.f32 %v1075_v2  ;;  %v1067_v5 = vsub.f32 %v1035_v34, %v1053_v4  ;;  %v1062_v6 = vpop.xlane.xlu1 %1061 }
 0x3eb   :  { %2427 = vpow2.f32 %v1081_v3  ;;  %v1070_v7 = vsub.f32 %v1038_v38, %v1062_v6 }
 0x3ec   :  { %v1079_v8 = vmul.f32 1.442695, %v1067_v5 }
 0x3ed   :  { %v1085_v9 = vmul.f32 1.442695, %v1070_v7  ;;  %v1059_v10 = vpop.xlane.xlu0 %1058 }
 0x3ee   :  { %2429 = vpow2.f32 %v1079_v8  ;;  %v1069_v11 = vsub.f32 %v1037_v41, %v1059_v10  ;;  %v428_v18 = vpop.permute.xlu1 %427 }
 0x3ef   :  { %2431 = vpow2.f32 %v1085_v9 }
 0x3f0   :  { %v1083_v12 = vmul.f32 1.442695, %v1069_v11 }
 0x3f1   :  { %v426_v21 = vpop.permute.xlu0 %425 }
 0x3f2   :  { %2433 = vpow2.f32 %v1083_v12 }
 0x3f3   :  { %v2424_v13 = vpop.eup %2423 }
 0x3f4   :  { %2325 = vmatmul.mubr.msk.f32.vlgmr.msra.gmra.mxu1 %vm436_vm2, %v2424_v13  ;;  %v1096_v14 = vsel %vm436_vm2, %v2424_v13, 0.0 }
 0x3f5   :  { %2333 = vmatpush3.msra.mxu1 %v422_v46  ;;  %1097 = vadd.xlane.f32.xlu1 %v1096_v14  ;;  %v1743_v46 = vld [vmem:[%s2955_s9] sm:$0xff]  ;;  %s2512_s9 = smov 24  }
 0x3f6   :  { %2334 = vmatprep.mubr.msk.f32.mxu1 %vm2507_vm1, %v2506_v42  ;;  %2342 = vmatprep.subr.mxu1 %v2506_v42 }
 0x3f7   :  { %v2426_v15 = vpop.eup %2425 }
 0x3f8   :  { %v2428_v16 = vpop.eup %2427  ;;  %2320 = vmatmul.mubr.msk.f32.vlgmr.msra.gmra.mxu0 %vm436_vm2, %v2426_v15  ;;  %v1093_v17 = vsel %vm436_vm2, %v2426_v15, 0.0 }
 0x3f9   :  { %2328 = vmatpush3.msra.mxu0 %v420_v48  ;;  %2335 = vmatmul.mubr.msk.f32.vlgmr.msra.gmra.mxu1 %vm436_vm2, %v2428_v16  ;;  %v1102_v22 = vsel %vm436_vm2, %v2428_v16, 0.0 }
 0x3fa   :  { %2343 = vmatpush3.msra.mxu1 %v428_v18  ;;  %1094 = vadd.xlane.f32.xlu0 %v1093_v17 }
 0x3fb   :  { %v2430_v19 = vpop.eup %2429  ;;  %2329 = vmatprep.mubr.msk.f32.mxu0 %vm2507_vm1, %v2506_v42  ;;  %2337 = vmatprep.subr.mxu0 %v2506_v42 }
 0x3fc   :  { %v2432_v20 = vpop.eup %2431  ;;  %2330 = vmatmul.mubr.msk.f32.vlgmr.msra.gmra.mxu0 %vm436_vm2, %v2430_v19  ;;  %2344 = vmatprep.mubr.msk.f32.mxu1 %vm2507_vm1, %v2506_v42  ;;  %v1099_v25 = vsel %vm436_vm2, %v2430_v19, 0.0 }
 0x3fd   :  { %2338 = vmatpush3.msra.mxu0 %v426_v21  ;;  %2345 = vmatmul.mubr.msk.f32.vlgmr.msra.gmra.mxu1 %vm436_vm2, %v2432_v20  ;;  %v1108_v23 = vsel %vm436_vm2, %v2432_v20, 0.0 }
 0x3fe   :  { %1103 = vadd.xlane.f32.xlu0 %v1102_v22  ;;  %1109 = vadd.xlane.f32.xlu1 %v1108_v23  ;;  %v2145_v23 = vld [vmem:[%s2956_s10] ss:$0 sm:$0xff] }
 0x3ff   :  { %v2434_v24 = vpop.eup %2433  ;;  %2339 = vmatprep.mubr.msk.f32.mxu0 %vm2507_vm1, %v2506_v42  ;;  %2347 = vmatprep.subr.mxu0 %v1746_v36 }
 0x400   :  { %2340 = vmatmul.mubr.msk.f32.vlgmr.msra.gmra.mxu0 %vm436_vm2, %v2434_v24  ;;  %v1105_v27 = vsel %vm436_vm2, %v2434_v24, 0.0 }
 0x401   :  { %2348 = vmatpush3.msra.mxu0 %v1746_v36 }
 0x402   :  { %1100 = vadd.xlane.f32.xlu0 %v1099_v25  ;;  %1091 = vadd.xlane.f32.xlu1 %v1090_v26 }
 0x403   :  { %2349 = vmatprep.subr.mxu0 %v1745_v39 }
 0x404   :  { %2350 = vmatpush3.msra.mxu0 %v1745_v39  ;;  %v1884_v39 = vld [vmem:[%s2959_s13 + $0x18] sm:$0xff] }
 0x405   :  { %2351 = vmatprep.subr.mxu0 %v1744_v40  ;;  %2358 = vmatprep.subr.mxu1 %v1884_v39 }
 0x406   :  { %1106 = vadd.xlane.f32.xlu0 %v1105_v27  ;;  %2352 = vmatpush3.msra.mxu0 %v1744_v40  ;;  %v1883_v40 = vld [vmem:[%s2959_s13 + $0x10] sm:$0xff] }
 0x407   :  { %2353 = vmatprep.subr.mxu0 %v1743_v46  ;;  %2359 = vmatpush3.msra.mxu1 %v1884_v39 }
 0x408   :  { %2354 = vmatpush3.msra.mxu0 %v1743_v46  ;;  %2360 = vmatprep.subr.mxu1 %v1883_v40 }
 0x409   :  { %2361 = vmatpush3.msra.mxu1 %v1883_v40 }
 0x40a   :  { %1088 = vadd.xlane.f32.xlu0 %v1087_v28 }
 0x43f   :  { %v2821_v29 = vpop.f32.mrf.mxu0 }
 0x441   :  { %v2311_v30 = vpop.f32.mrf.mxu0 }
 0x443   :  { %v2823_v31 = vpop.f32.mrf.mxu1 }
 0x445   :  { %v2316_v42 = vpop.f32.mrf.mxu1 }
 0x47e   :  { %v1098_v33 = vpop.xlane.xlu1 %1097 }
 0x47f   :  { %2435 = vrcp.f32 %v1098_v33 }
 0x483   :  { %v1095_v32 = vpop.xlane.xlu0 %1094 }
 0x484   :  { %2437 = vrcp.f32 %v1095_v32 }
 0x487   :  { %v1104_v34 = vpop.xlane.xlu0 %1103  ;;  %v1110_v38 = vpop.xlane.xlu1 %1109 }
 0x488   :  { %2439 = vrcp.f32 %v1104_v34 }
 0x48b   :  { %v1101_v35 = vpop.xlane.xlu0 %1100  ;;  %v1092_v6 = vpop.xlane.xlu1 %1091 }
 0x48c   :  { %2441 = vrcp.f32 %v1101_v35  ;;  %v2436_v41 = vpop.eup %2435 }
 0x48f   :  { %v1107_v37 = vpop.xlane.xlu0 %1106 }
 0x490   :  { %2443 = vrcp.f32 %v1107_v37 }
 0x491   :  { %2445 = vrcp.f32 %v1110_v38  ;;  %v2438_v47 = vpop.eup %2437 }
 0x493   :  { %v1089_v5 = vpop.xlane.xlu0 %1088 }
 0x494   :  { %2447 = vrcp.f32 %v1089_v5  ;;  %v1999_v5 = vld [vmem:[%s2961_s15 + $0x40] sm:$0xff] }
 0x495   :  { %v2440_v49 = vpop.eup %2439  ;;  %2449 = vrcp.f32 %v1092_v6  ;;  %v1998_v6 = vld [vmem:[%s2961_s15 + $0x38] sm:$0xff] }
 0x499   :  { %v2442_v55 = vpop.eup %2441 }
 0x49d   :  { %v2444_v61 = vpop.eup %2443 }
 0x49e   :  { %v2446_v63 = vpop.eup %2445 }
 0x4a1   :  { %v2448_v9 = vpop.eup %2447 }
 0x4a2   :  { %v2450_v10 = vpop.eup %2449  ;;  %v1703_v12 = vmul.f32 %v2448_v9, %v2821_v29  ;;  %v1995_v9 = vld [vmem:[%s2961_s15 + $0x20] sm:$0xff] }
 0x4a3   :  { %v1704_v14 = vmul.f32 %v2450_v10, %v2823_v31  ;;  %v1994_v10 = vld [vmem:[%s2961_s15 + $0x18] sm:$0xff] }
 0x4b4   :  { %v1399_v43 = vpop.f32.mrf.mxu1 }
 0x4b5   :  { %v1706_v44 = vmul.f32 %v2436_v41, %v1399_v43  ;;  %v1882_v41 = vld [vmem:[%s2959_s13 + $0x8] sm:$0xff]  ;;  %v1881_v43 = vld [vmem:[%s2959_s13] sm:$0xff] }
 0x4b6   :  { %v2326_v45 = vpop.f32.mrf.mxu1  ;;  %2362 = vmatprep.subr.mxu1 %v1882_v41 }
 0x4b7   :  { %1715 = vrot.lane.b32.xlu1 %v1706_v44, %s2505_s28  ;;  %2363 = vmatpush3.msra.mxu1 %v1882_v41 }
 0x4b8   :  { %v1326_v48 = vpop.f32.mrf.mxu0  ;;  %2364 = vmatprep.subr.mxu1 %v1881_v43 }
 0x4b9   :  { %v1705_v50 = vmul.f32 %v2438_v47, %v1326_v48  ;;  %v1545_v51 = vpop.f32.mrf.mxu1  ;;  %2365 = vmatpush3.msra.mxu1 %v1881_v43 }
 0x4ba   :  { %v1708_v52 = vmul.f32 %v2440_v49, %v1545_v51  ;;  %v2321_v53 = vpop.f32.mrf.mxu0  ;;  %v2148_v51 = vld [vmem:[%s2957_s11] ss:$0 sm:$0xff] }
 0x4bb   :  { %v2336_v54 = vpop.f32.mrf.mxu1  ;;  %1713 = vrot.lane.b32.xlu0 %v1705_v50, %s2505_s28  ;;  %v2149_v53 = vld [vmem:[%s2958_s12] ss:$0 sm:$0xff] }
 0x4bc   :  { %1723 = vrot.lane.b32.xlu1 %v1708_v52, %s2511_s5  ;;  %v1472_v58 = vpop.f32.mrf.mxu0 }
 0x4bd   :  { %v1707_v56 = vmul.f32 %v2442_v55, %v1472_v58  ;;  %v1691_v57 = vpop.f32.mrf.mxu1 }
 0x4be   :  { %v2331_v59 = vpop.f32.mrf.mxu0  ;;  %v1710_v3 = vmul.f32 %v2446_v63, %v1691_v57  ;;  %v2003_v63 = vld [vmem:[%s2961_s15 + $0x60] sm:$0xff] }
 0x4bf   :  { %v2346_v60 = vpop.f32.mrf.mxu1 }
 0x4c0   :  { %1721 = vrot.lane.b32.xlu1 %v1707_v56, %s2511_s5  ;;  %v1618_v62 = vpop.f32.mrf.mxu0  ;;  %v2006_v60 = vld [vmem:[%s2961_s15 + $0x78] sm:$0xff]  ;;  %s2513_s5 = smov [#allocation5]  }
 0x4c1   :  { %v1709_v2 = vmul.f32 %v2444_v61, %v1618_v62  ;;  %2369 = vmatprep.subr.mxu0 %v2006_v60  ;;  %v2005_v61 = vld [vmem:[%s2961_s15 + $0x70] sm:$0xff]  ;;  %v2004_v62 = vld [vmem:[%s2961_s15 + $0x68] sm:$0xff] }
 0x4c2   :  { %v2341_v4 = vpop.f32.mrf.mxu0 }
 0x4c3   :  { %1729 = vrot.lane.b32.xlu0 %v1709_v2, %s2512_s9  ;;  %v2002_v2 = vld [vmem:[%s2961_s15 + $0x58] sm:$0xff]  ;;  %v2000_v4 = vld [vmem:[%s2961_s15 + $0x48] sm:$0xff] }
 0x4c4   :  { %1731 = vrot.lane.b32.xlu1 %v1710_v3, %s2512_s9  ;;  %v2001_v3 = vld [vmem:[%s2961_s15 + $0x50] sm:$0xff]  ;;  %s2098_s9 = sshll.u32 %s2513_s5, 4  ;;  %s2099_s9 = int_to_ptr.vmem [resolvable:$true] %s2098_s9 }
 0x4c5   :  { %s2479_s0 = scalar_lea.vmem %s2099_s9, 256  ;;  %p2484_p6 = scmp.lt.s32.totalorder %s2099_s9, %s2099_s9 }
 0x4c6   :  { %p2480_p5 = scmp.ne.s32.totalorder %s2099_s9, %s2479_s0  ;;  %p2485_p7 = scmp.lt.s32.totalorder %s2479_s0, %s2479_s0 }
 0x4c8   :  { %p2486_p8 = por %p2485_p7, %p2484_p6 }
 0x4ca   :  { %p2487_p9 = pnand %p2486_p8, %p2480_p5 }
 0x529   :  { %v1716_v7 = vpop.permute.xlu1 %1715 }
 0x52a   :  { %v1736_v16 = vsel %vm436_vm2, %v1704_v14, %v1716_v7  ;;  %v1997_v7 = vld [vmem:[%s2961_s15 + $0x30] sm:$0xff]  ;;  %v2150_v14 = vld [vmem:[%s2960_s14] ss:$0 sm:$0xff] }
 0x52d   :  { %v1714_v11 = vpop.permute.xlu0 %1713 }
 0x52e   :  { %v1724_v8 = vpop.permute.xlu1 %1723  ;;  %v1735_v15 = vsel %vm436_vm2, %v1703_v12, %v1714_v11  ;;  %v1993_v11 = vld [vmem:[%s2961_s15 + $0x10] sm:$0xff]  ;;  %v1992_v12 = vld [vmem:[%s2961_s15 + $0x8] sm:$0xff] }
 0x52f   :  { %v1739_v19 = vsel %vm1737_vm4, %v1736_v16, %v1724_v8  ;;  %v1996_v8 = vld [vmem:[%s2961_s15 + $0x28] sm:$0xff] }
 0x532   :  { %v1722_v13 = vpop.permute.xlu1 %1721 }
 0x533   :  { %v1738_v17 = vsel %vm1737_vm4, %v1735_v15, %v1722_v13  ;;  %v1991_v13 = vld [vmem:[%s2961_s15] sm:$0xff] }
 0x535   :  { %v1730_v18 = vpop.permute.xlu0 %1729 }
 0x536   :  { %v1741_v20 = vsel %vm1740_vm5, %v1738_v17, %v1730_v18  ;;  %v1732_v21 = vpop.permute.xlu1 %1731 }
 0x537   :  { %v1742_v22 = vsel %vm1740_vm5, %v1739_v19, %v1732_v21  ;;  %2355 = vmatprep.mubr.msk.f32.mxu0 %vm75_vm0, %v1741_v20 }
 0x538   :  { %2356 = vmatmul.mubr.msk.f32.vlgmr.msra.gmra.mxu0 %vm75_vm0, %v1742_v22 }
 0x539   :  { %2370 = vmatpush3.msra.mxu0 %v2006_v60 }
 0x53a   :  { %2371 = vmatprep.subr.mxu0 %v2005_v61 }
 0x53b   :  { %2372 = vmatpush3.msra.mxu0 %v2005_v61 }
 0x53c   :  { %2373 = vmatprep.subr.mxu0 %v2004_v62 }
 0x53d   :  { %2374 = vmatpush3.msra.mxu0 %v2004_v62 }
 0x53e   :  { %2375 = vmatprep.subr.mxu0 %v2003_v63 }
 0x53f   :  { %2376 = vmatpush3.msra.mxu0 %v2003_v63 }
 0x540   :  { %2377 = vmatprep.subr.mxu0 %v2002_v2 }
 0x541   :  { %2378 = vmatpush3.msra.mxu0 %v2002_v2 }
 0x542   :  { %2379 = vmatprep.subr.mxu0 %v2001_v3 }
 0x543   :  { %2380 = vmatpush3.msra.mxu0 %v2001_v3 }
 0x544   :  { %2381 = vmatprep.subr.mxu0 %v2000_v4 }
 0x545   :  { %2382 = vmatpush3.msra.mxu0 %v2000_v4 }
 0x546   :  { %2383 = vmatprep.subr.mxu0 %v1999_v5 }
 0x547   :  { %2384 = vmatpush3.msra.mxu0 %v1999_v5 }
 0x548   :  { %2385 = vmatprep.subr.mxu0 %v1998_v6 }
 0x549   :  { %2386 = vmatpush3.msra.mxu0 %v1998_v6 }
 0x54a   :  { %2387 = vmatprep.subr.mxu0 %v1997_v7 }
 0x54b   :  { %2388 = vmatpush3.msra.mxu0 %v1997_v7 }
 0x54c   :  { %2389 = vmatprep.subr.mxu0 %v1996_v8 }
 0x54d   :  { %2390 = vmatpush3.msra.mxu0 %v1996_v8 }
 0x54e   :  { %2391 = vmatprep.subr.mxu0 %v1995_v9 }
 0x54f   :  { %2392 = vmatpush3.msra.mxu0 %v1995_v9 }
 0x550   :  { %2393 = vmatprep.subr.mxu0 %v1994_v10 }
 0x551   :  { %2394 = vmatpush3.msra.mxu0 %v1994_v10 }
 0x552   :  { %2395 = vmatprep.subr.mxu0 %v1993_v11 }
 0x553   :  { %2396 = vmatpush3.msra.mxu0 %v1993_v11 }
 0x554   :  { %2397 = vmatprep.subr.mxu0 %v1992_v12 }
 0x555   :  { %2398 = vmatpush3.msra.mxu0 %v1992_v12 }
 0x556   :  { %2399 = vmatprep.subr.mxu0 %v1991_v13 }
 0x557   :  { %2400 = vmatpush3.msra.mxu0 %v1991_v13 }
 0x5f8   :  { %v2357_v24 = vpop.f32.mrf.mxu0 }
 0x5f9   :  { %v1832_v25 = vadd.f32 %v2357_v24, %v2145_v23 }
 0x5fa   :  { %v1826_v26 = vpop.f32.mrf.mxu0 }
 0x5fb   :  { %v2849_v27 = vadd.f32 %v1832_v25, %v2612_v1  ;;  %v1827_v28 = vadd.f32 %v2145_v23, %v1826_v26 }
 0x5fd   :  { %v2852_v29 = vadd.f32 %v1827_v28, %v2610_v0  ;;  %v1842_v30 = vsel %vm75_vm0, %v2849_v27, 0.0 }
 0x5fe   :  { %1843 = vadd.xlane.f32.xlu1 %v1842_v30 }
 0x5ff   :  { %v1839_v31 = vsel %vm75_vm0, %v2852_v29, 0.0 }
 0x600   :  { %1840 = vadd.xlane.f32.xlu0 %v1839_v31 }
 0x687   :  { %v1844_v42 = vpop.xlane.xlu1 %1843 }
 0x688   :  { %v1846_v32 = vmul.f32 0.03125, %v1844_v42 }
 0x689   :  { %v1841_v33 = vpop.xlane.xlu0 %1840 }
 0x68a   :  { %v1845_v34 = vmul.f32 0.03125, %v1841_v33  ;;  %v1848_v35 = vsub.f32 %v2849_v27, %v1846_v32 }
 0x68c   :  { %v1847_v1 = vsub.f32 %v2852_v29, %v1845_v34  ;;  %v1850_v37 = vmul.f32 %v1848_v35, %v1848_v35 }
 0x68e   :  { %v1849_v36 = vmul.f32 %v1847_v1, %v1847_v1  ;;  %v1854_v38 = vsel %vm75_vm0, %v1850_v37, 0.0 }
 0x690   :  { %v1851_v0 = vsel %vm75_vm0, %v1849_v36, 0.0 }
 0x691   :  { %1852 = vadd.xlane.f32.xlu0 %v1851_v0  ;;  %v2153_v0 = vld [vmem:[%s2962_s16] ss:$0 sm:$0xff] }
 0x695   :  { %1855 = vadd.xlane.f32.xlu0 %v1854_v38 }
 0x71a   :  { %v1853_v44 = vpop.xlane.xlu0 %1852 }
 0x71b   :  { %v1857_v45 = vmul.f32 0.03125, %v1853_v44 }
 0x71d   :  { %v1859_v46 = vadd.f32 1e-05, %v1857_v45 }
 0x71e   :  { %v1856_v47 = vpop.xlane.xlu0 %1855 }
 0x71f   :  { %2451 = vrsqrt.f32 %v1859_v46  ;;  %v1858_v48 = vmul.f32 0.03125, %v1856_v47 }
 0x721   :  { %v1860_v49 = vadd.f32 1e-05, %v1858_v48 }
 0x723   :  { %2453 = vrsqrt.f32 %v1860_v49 }
 0x72c   :  { %v2452_v50 = vpop.eup %2451 }
 0x72d   :  { %v1863_v52 = vmul.f32 %v2452_v50, %v1847_v1 }
 0x72f   :  { %v1871_v54 = vmul.f32 %v2148_v51, %v1863_v52 }
 0x730   :  { %v2454_v55 = vpop.eup %2453 }
 0x731   :  { %v1864_v58 = vmul.f32 %v2454_v55, %v1848_v35  ;;  %v1879_v56 = vadd.f32 %v2149_v53, %v1871_v54 }
 0x733   :  { %v1872_v57 = vmul.f32 %v2148_v51, %v1864_v58  ;;  %2366 = vmatprep.mubr.msk.f32.mxu1 %vm75_vm0, %v1879_v56 }
 0x735   :  { %v1880_v59 = vadd.f32 %v2149_v53, %v1872_v57 }
 0x737   :  { %2367 = vmatmul.mubr.msk.f32.vlgmr.msra.gmra.mxu1 %vm75_vm0, %v1880_v59 }
 0x7f7   :  { %v2368_v15 = vpop.f32.mrf.mxu1 }
 0x7f8   :  { %v1970_v16 = vadd.f32 %v2368_v15, %v2150_v14 }
 0x7f9   :  { %v1964_v17 = vpop.f32.mrf.mxu1 }
 0x7fa   :  { %v1974_v18 = vmul.f32 %v1970_v16, %v1970_v16  ;;  %v1965_v19 = vadd.f32 %v2150_v14, %v1964_v17 }
 0x7fc   :  { %v1976_v20 = vmul.f32 %v1974_v18, %v1970_v16  ;;  %v1973_v21 = vmul.f32 %v1965_v19, %v1965_v19 }
 0x7fe   :  { %v1978_v22 = vmul.f32 0.044715, %v1976_v20  ;;  %v1975_v23 = vmul.f32 %v1973_v21, %v1965_v19 }
 0x800   :  { %v1980_v24 = vadd.f32 %v1978_v22, %v1970_v16  ;;  %v1977_v25 = vmul.f32 0.044715, %v1975_v23 }
 0x802   :  { %v1982_v26 = vmul.f32 0.7978846, %v1980_v24  ;;  %v1979_v28 = vadd.f32 %v1977_v25, %v1965_v19 }
 0x804   :  { %2455 = vtanh.f32 %v1982_v26  ;;  %v1981_v30 = vmul.f32 0.7978846, %v1979_v28 }
 0x806   :  { %2457 = vtanh.f32 %v1981_v30 }
 0x811   :  { %v2456_v31 = vpop.eup %2455 }
 0x812   :  { %v1986_v42 = vadd.f32 1.0, %v2456_v31 }
 0x813   :  { %v2458_v32 = vpop.eup %2457 }
 0x814   :  { %v1985_v33 = vadd.f32 1.0, %v2458_v32  ;;  %v1988_v34 = vmul.f32 0.5, %v1986_v42 }
 0x816   :  { %v1987_v35 = vmul.f32 0.5, %v1985_v33  ;;  %v1990_v36 = vmul.f32 %v1988_v34, %v1970_v16 }
 0x818   :  { %v1989_v1 = vmul.f32 %v1987_v35, %v1965_v19 }
 0x81a   :  { %2401 = vmatprep.mubr.f32.mxu0 %v1989_v1 }
 0x81b   :  { %2402 = vmatmul.mubr.f32.vlgmr.msra.gmra.mxu0 %v1990_v36 }
 0x8db   :  { %v2403_v37 = vpop.f32.mrf.mxu0 }
 0x8dc   :  { %v2086_v38 = vadd.f32 %v2403_v37, %v2153_v0 }
 0x8dd   :  { %v2080_v39 = vpop.f32.mrf.mxu0 }
 0x8de   :  { %v2090_v40 = vadd.f32 %v2086_v38, %v2849_v27  ;;  %v2081_v41 = vadd.f32 %v2153_v0, %v2080_v39 }
 0x8e0   :  { %2092 = vst.msk [vmem:[#allocation5 + $0x8] sm:$0xff] %vm75_vm0, %v2090_v40  ;;  %v2089_v43 = vadd.f32 %v2081_v41, %v2852_v29 }
 0x8e2   :  { %2091 = vst.msk [vmem:[#allocation5] sm:$0xff] %vm75_vm0, %v2089_v43 }
 0x8e3   :  { %2490 = shalt.err (!%p2487_p9)
}
 0x8e4   :  { %2104 = dma.vmem_to_hbm [thread:$0]  %s2099_s9, 256, %s2963_s17, [#allocation4], %s2504_s27, %s2504_s27, %s2505_s28  }
 0x8e5   :  { %2501 = dma.done.wait [#allocation4], 256  }
 0x8e6   :  { %2502 = vsyncadd [#allocation4], 4294967040 }
 0x8e7   :  { %2108 = vsyncpa [#allocation3], 1 }
 0x8e8   :  { %2109 = vsyncpa [#allocation4], 1 }

</bundles_post_ra>
